<compile_context>
chip_gen: v6e
topology: v6e:2x2x1
jax: 0.10.0
libtpu: 0.0.40
codegen_flags: <defaults>
</compile_context>

<pallas_src>
import functools

import jax
import jax.numpy as jnp
from jax.experimental import pallas as pl
from jax.experimental.pallas import tpu as pltpu

CPAD = 128        # lane-padded class dim for the MXU matmul (weight pad only; tiny)
TB_MAX = 2048     # max rows per grid step
NCORES_LOSS = 2   # outer 'parallel' axis width for the loss reduction (v7x megacore)


def _row_tile(batch, per_row_bytes, itemsize):
    """Rows per grid step: as large as possible under a conservative VMEM budget."""
    sub = 8 if itemsize >= 4 else 16               # sublane granularity (bf16 packs x2)
    budget = 6 << 20                               # well under v5e's 16 MiB scoped default
    tb = min(TB_MAX, max(sub, (budget // max(per_row_bytes, 1)) // sub * sub))
    # If the whole batch fits in one tile, use block == full array (always legal).
    return batch if batch <= tb else tb


def _pad_params(w, b):
    k, nc = w.shape
    w_pad = jnp.zeros((k, CPAD), w.dtype).at[:, :nc].set(w)          # lane-dense MXU rhs
    b_pad = jnp.zeros((1, CPAD), jnp.float32).at[:, :nc].set(
        b.reshape(1, nc).astype(jnp.float32))
    return w_pad, b_pad


# ---------------- kernels ----------------

def linear_sigmoid_kernel(x_ref, w_ref, b_ref, o_ref, *, num_classes):
    # logits = x @ W_pad   (MXU, f32 accumulate, lane-dense N=128)
    logits = jnp.dot(x_ref[...], w_ref[...], preferred_element_type=jnp.float32)
    z = logits + b_ref[...]
    # narrow (tb, num_classes) masked store: 12 B/row writeback instead of 512 B/row
    o_ref[...] = jax.nn.sigmoid(z[:, :num_classes]).astype(o_ref.dtype)


def fused_loss_kernel(x_ref, w_ref, b_ref, y_ref, loss_ref, *,
                      num_classes, n_valid, tile_rows, steps_per_core):
    # Fused linear -> sigmoid -> CrossEntropyLoss(sigmoid_out, y), partial sum per core.
    c = pl.program_id(0)                 # core index  ('parallel')
    s = pl.program_id(1)                 # reduction step within core ('arbitrary')
    flat = c * steps_per_core + s        # logical row-block index (may overshoot; masked)

    @pl.when(s == 0)
    def _():
        loss_ref[...] = jnp.zeros_like(loss_ref)

    logits = jnp.dot(x_ref[...], w_ref[...], preferred_element_type=jnp.float32)
    p = jax.nn.sigmoid(logits + b_ref[...])                       # (tb, CPAD) f32

    lane = jax.lax.broadcasted_iota(jnp.int32, p.shape, 1)        # (tb, CPAD)
    class_mask = lane < num_classes

    # sigmoid outputs lie in (0,1): exp cannot overflow -> no max-subtraction needed.
    e = jnp.where(class_mask, jnp.exp(p), 0.0)
    lse = jnp.log(jnp.sum(e, axis=-1, keepdims=True))             # (tb, 1)

    labels = y_ref[...]                                           # (tb, 1) int32
    picked = jnp.sum(jnp.where(lane == labels, p, 0.0),
                     axis=-1, keepdims=True)                      # (tb, 1)

    # mask rows that only exist because of edge-block overhang / core overshoot
    row = flat * tile_rows + jax.lax.broadcasted_iota(jnp.int32, (tile_rows, 1), 0)
    per_row = jnp.where(row < n_valid, lse - picked, 0.0)         # NaN-safe select

    # per-core partial sum, accumulated in this core's own output block
    loss_ref[...] = loss_ref[...] + jnp.sum(per_row)


# ---------------- wrappers ----------------

def linear_sigmoid(x, w, b):
    batch, k = x.shape
    nc = w.shape[1]
    per_row = k * x.dtype.itemsize + 4 * CPAD
    tb = _row_tile(batch, per_row, x.dtype.itemsize)
    nb = pl.cdiv(batch, tb)
    w_pad, b_pad = _pad_params(w, b)
    kernel = functools.partial(linear_sigmoid_kernel, num_classes=nc)
    return pl.pallas_call(
        kernel,
        out_shape=jax.ShapeDtypeStruct((batch, nc), jnp.float32),
        grid=(nb,),
        in_specs=[
            pl.BlockSpec((tb, k), lambda i: (i, 0)),
            pl.BlockSpec((k, CPAD), lambda i: (0, 0)),
            pl.BlockSpec((1, CPAD), lambda i: (0, 0)),
        ],
        out_specs=pl.BlockSpec((tb, nc), lambda i: (i, 0)),
        compiler_params=pltpu.CompilerParams(
            dimension_semantics=("parallel",)),
    )(x, w_pad, b_pad)


def cross_entropy_of_sigmoid(x, w, b, y):
    batch, k = x.shape
    nc = w.shape[1]
    per_row = k * x.dtype.itemsize + 6 * CPAD
    tb = _row_tile(batch, per_row, x.dtype.itemsize)
    nb = pl.cdiv(batch, tb)                 # total row-blocks
    spc = pl.cdiv(nb, NCORES_LOSS)          # reduction steps per core
    w_pad, b_pad = _pad_params(w, b)
    y2 = y.reshape(batch, 1).astype(jnp.int32)     # y.squeeze() equivalent, no pad copy

    # Clamp the row-block index so DMAs never leave the array; overshot steps are
    # fully masked in-kernel via the row-valid test (flat*tb >= batch).
    def row_map(c, s):
        return (jnp.minimum(c * spc + s, nb - 1), 0)

    kernel = functools.partial(
        fused_loss_kernel, num_classes=nc, n_valid=batch,
        tile_rows=tb, steps_per_core=spc)

    partial = pl.pallas_call(
        kernel,
        out_shape=jax.ShapeDtypeStruct((NCORES_LOSS * 8, CPAD), jnp.float32),
        grid=(NCORES_LOSS, spc),
        in_specs=[
            pl.BlockSpec((tb, k), row_map),
            pl.BlockSpec((k, CPAD), lambda c, s: (0, 0)),
            pl.BlockSpec((1, CPAD), lambda c, s: (0, 0)),
            pl.BlockSpec((tb, 1), row_map),
        ],
        # one (8, CPAD) partial-sum block per core: the 'parallel' axis writes
        # disjoint blocks, so the accumulator stays correct under megacore split.
        out_specs=pl.BlockSpec((8, CPAD), lambda c, s: (c, 0)),
        compiler_params=pltpu.CompilerParams(
            dimension_semantics=("parallel", "arbitrary")),
    )(x, w_pad, b_pad, y2)

    per_core = partial.reshape(NCORES_LOSS, 8, CPAD)[:, 0, 0]
    return jnp.sum(per_core) / batch


def torch_model_forward(x, w, b, y=None):
    """Equivalent of TorchModel.forward.

    x: (batch, input_size) float (f32 or bf16)
    w: (input_size, 3) float (transposed nn.Linear weight)
    b: (1, 3) float
    y: optional (batch,) or (batch, 1) int labels
    """
    if y is None:
        return linear_sigmoid(x, w, b)
    return cross_entropy_of_sigmoid(x, w, b, y)


# ---------------- main ----------------

if __name__ == "__main__":
    batch, input_size, num_classes = 8, 32, 3

    key = jax.random.PRNGKey(0)
    kx, kw, kb, ky = jax.random.split(key, 4)

    w = jax.random.normal(kw, (input_size, num_classes), dtype=jnp.float32) * 0.1
    b = jax.random.normal(kb, (1, num_classes), dtype=jnp.float32) * 0.1
    x = jax.random.normal(kx, (batch, input_size), dtype=jnp.float32)
    y = jax.random.randint(ky, (batch, 1), 0, num_classes, dtype=jnp.int32)

    # ---- f32 path (module-faithful) ----
    y_pred = torch_model_forward(x, w, b)
    jax.block_until_ready(y_pred)
    loss = torch_model_forward(x, w, b, y)
    jax.block_until_ready(loss)

    p_ref = jax.nn.sigmoid(x @ w + b)
    lse_ref = jax.nn.logsumexp(p_ref, axis=-1)
    picked_ref = p_ref[jnp.arange(batch), y.reshape(-1)]
    loss_ref = jnp.mean(lse_ref - picked_ref)
    assert y_pred.shape == (batch, num_classes)
    assert jnp.allclose(y_pred, p_ref, atol=2e-2, rtol=2e-2), "y_pred mismatch (f32)"
    assert jnp.allclose(loss, loss_ref, atol=2e-2, rtol=2e-2), "loss mismatch (f32)"

    # ---- bf16-producer path (halves the dominant x HBM read; math stays f32) ----
    xb, wb = x.astype(jnp.bfloat16), w.astype(jnp.bfloat16)
    y_pred_bf = torch_model_forward(xb, wb, b)
    loss_bf = torch_model_forward(xb, wb, b, y)
    jax.block_until_ready((y_pred_bf, loss_bf))

    p_ref_bf = jax.nn.sigmoid(xb.astype(jnp.float32) @ wb.astype(jnp.float32) + b)
    lse_bf = jax.nn.logsumexp(p_ref_bf, axis=-1)
    picked_bf = p_ref_bf[jnp.arange(batch), y.reshape(-1)]
    loss_ref_bf = jnp.mean(lse_bf - picked_bf)
    assert jnp.allclose(y_pred_bf, p_ref_bf, atol=2e-2, rtol=2e-2), "y_pred mismatch (bf16)"
    assert jnp.allclose(loss_bf, loss_ref_bf, atol=2e-2, rtol=2e-2), "loss mismatch (bf16)"

    print("KERNEL_OK")
</pallas_src>

<mosaic_0001>
module attributes {stable_mosaic.version = 11 : i64} {
  func.func @linear_sigmoid_kernel(%arg0: i32, %arg1: memref<8x32xf32, #tpu.memory_space<vmem>>, %arg2: memref<32x128xf32, #tpu.memory_space<vmem>>, %arg3: memref<1x128xf32, #tpu.memory_space<vmem>>, %arg4: memref<8x3xf32, #tpu.memory_space<vmem>>) attributes {dimension_semantics = [#tpu.dimension_semantics<parallel>], iteration_bounds = array<i64: 1>, scalar_prefetch = 0 : i64, scratch_operands = 0 : i64, tpu.core_type = #tpu.core_type<tc>, window_params = [{transform_indices = @transform_0, window_bounds = array<i64: 8, 32>}, {pipeline_mode = #tpu.pipeline_mode<synchronous>, transform_indices = @transform_1, window_bounds = array<i64: 32, 128>}, {pipeline_mode = #tpu.pipeline_mode<synchronous>, transform_indices = @transform_2, window_bounds = array<i64: 1, 128>}, {transform_indices = @transform_3, window_bounds = array<i64: 8, 3>}]} {
    %c0 = arith.constant 0 : index
    %c0_0 = arith.constant 0 : index
    %0 = vector.load %arg1[%c0, %c0_0] : memref<8x32xf32, #tpu.memory_space<vmem>>, vector<8x32xf32>
    %c0_1 = arith.constant 0 : index
    %c0_2 = arith.constant 0 : index
    %1 = vector.load %arg2[%c0_1, %c0_2] : memref<32x128xf32, #tpu.memory_space<vmem>>, vector<32x128xf32>
    %cst = arith.constant dense<0.000000e+00> : vector<8x128xf32>
    %2 = tpu.matmul %0, %1, %cst {dimension_numbers = #tpu.dot_dimension_numbers<[1], [0], [0], [1], [0, 0, 1, 1], [], []>} : vector<8x32xf32>, vector<32x128xf32>, vector<8x128xf32> -> vector<8x128xf32>
    %c0_3 = arith.constant 0 : index
    %c0_4 = arith.constant 0 : index
    %3 = vector.load %arg3[%c0_3, %c0_4] : memref<1x128xf32, #tpu.memory_space<vmem>>, vector<1x128xf32>
    %4 = vector.broadcast %3 : vector<1x128xf32> to vector<8x128xf32>
    %5 = arith.addf %2, %4 : vector<8x128xf32>
    %6 = vector.extract_strided_slice %5 {offsets = [0, 0], sizes = [8, 3], strides = [1, 1]} : vector<8x128xf32> to vector<8x3xf32>
    %7 = arith.negf %6 : vector<8x3xf32>
    %8 = math.exp %7 : vector<8x3xf32>
    %cst_5 = arith.constant 1.000000e+00 : f32
    %9 = vector.broadcast %cst_5 : f32 to vector<8x3xf32>
    %10 = arith.addf %9, %8 : vector<8x3xf32>
    %11 = arith.divf %9, %10 : vector<8x3xf32>
    %c0_6 = arith.constant 0 : index
    %c0_7 = arith.constant 0 : index
    %12 = vector.load %arg4[%c0_6, %c0_7] : memref<8x3xf32, #tpu.memory_space<vmem>>, vector<8x3xf32>
    tpu.vector_store %arg4[%c0_6, %c0_7], %11 {strides = array<i32>} : memref<8x3xf32, #tpu.memory_space<vmem>>, vector<8x3xf32>,
    return
  }
  func.func @transform_0(%arg0: i32) -> (i32, i32) {
    %c0_i32 = arith.constant 0 : i32
    %c0_i32_0 = arith.constant 0 : i32
    return %arg0, %c0_i32 : i32, i32
  }
  func.func @transform_1(%arg0: i32) -> (i32, i32) {
    %c0_i32 = arith.constant 0 : i32
    %c0_i32_0 = arith.constant 0 : i32
    %c0_i32_1 = arith.constant 0 : i32
    return %c0_i32, %c0_i32_0 : i32, i32
  }
  func.func @transform_2(%arg0: i32) -> (i32, i32) {
    %c0_i32 = arith.constant 0 : i32
    %c0_i32_0 = arith.constant 0 : i32
    %c0_i32_1 = arith.constant 0 : i32
    return %c0_i32, %c0_i32_0 : i32, i32
  }
  func.func @transform_3(%arg0: i32) -> (i32, i32) {
    %c0_i32 = arith.constant 0 : i32
    %c0_i32_0 = arith.constant 0 : i32
    return %arg0, %c0_i32 : i32, i32
  }
}

</mosaic_0001>

<bundles_post_ra>
// kernel: tpu_custom_call.1
= control target key start
LH: loop header
LB: loop body
LE: loop exit
PB: predicated region body
PF: predicated region fallthrough
CT: control target
= control target key end

     0   :  { %8 = vsyncpa [#allocation3], 0  ;;  %s251_s0 = inlined_call_operand.hbm [shape: f32[8,32], index: 0, kind: input, shape index: {}]   ;;  %s252_s1 = inlined_call_operand.hbm [shape: f32[32,128], index: 1, kind: input, shape index: {}]   ;;  %s253_s2 = inlined_call_operand.vmem [shape: f32[1,128], index: 2, kind: input, shape index: {}]   ;;  %s254_s3 = inlined_call_operand.vmem [shape: f32[8,3], index: 3, kind: output, shape index: {}]  }
   0x1   :  { %9 = vsyncpa [#allocation5], 0  ;;  %s213_s12 = smov [#allocation2]   ;;  %s214_s14 = smov [#allocation4]  }
   0x2   :  { %s16_s13 = sshll.u32 %s213_s12, 4  ;;  %s25_s15 = sshll.u32 %s214_s14, 4  ;;  %s17_s13 = int_to_ptr.vmem [resolvable:$true] %s16_s13  ;;  %s26_s15 = int_to_ptr.vmem [resolvable:$true] %s25_s15 }
   0x3   :  { %s177_s16 = scalar_lea.vmem %s17_s13, 128  ;;  %p182_p1 = scmp.lt.s32.totalorder %s17_s13, %s17_s13 }
   0x4   :  { %p178_p0 = scmp.ne.s32.totalorder %s17_s13, %s177_s16  ;;  %p183_p2 = scmp.lt.s32.totalorder %s177_s16, %s177_s16 }
   0x6   :  { %p184_p3 = por %p183_p2, %p182_p1 }
   0x8   :  { %p185_p4 = pnand %p184_p3, %p178_p0 }
   0xa   :  { %188 = shalt.err (!%p185_p4)
}
   0xb   :  { %19 = dma.hbm_to_vmem [thread:$0]  %s251_s0, 128, %s17_s13, [#allocation3]  }
   0xc   :  { %s197_s19 = scalar_lea.vmem %s26_s15, 512  ;;  %p202_p6 = scmp.lt.s32.totalorder %s26_s15, %s26_s15 }
   0xd   :  { %p198_p5 = scmp.ne.s32.totalorder %s26_s15, %s197_s19  ;;  %p203_p7 = scmp.lt.s32.totalorder %s197_s19, %s197_s19 }
   0xf   :  { %p204_p8 = por %p203_p7, %p202_p6 }
  0x11   :  { %p205_p9 = pnand %p204_p8, %p198_p5 }
  0x13   :  { %208 = shalt.err (!%p205_p9)
}
  0x14   :  { %s215_s20 = smov 128   ;;  %s216_s21 = smov 8  }
  0x15   :  { %31 = dma.hbm_to_vmem [thread:$0]  %s252_s1, 512, %s26_s15, [#allocation5], %s215_s20, %s215_s20, %s216_s21  }
  0x16   :  { %209 = dma.done.wait [#allocation3], 128  }
  0x17   :  { %210 = vsyncadd [#allocation3], 4294967168 }
  0x18   :  { %211 = dma.done.wait [#allocation5], 512  }
  0x19   :  { %212 = vsyncadd [#allocation5], 4294966784  ;;  %v217_v0 = vmov 0.0   ;;  %vm218_vm0 = vmmov 0   ;;  %v44_v1 = vld [vmem:[#allocation4 + $0x18] sm:$0xff]  ;;  %v43_v2 = vld [vmem:[#allocation4 + $0x10] sm:$0xff] }
  0x1a   :  { %148 = vmatprep.subr.mxu0 %v217_v0  ;;  %156 = vmatprep.mubr.msk.f32.mxu0 %vm218_vm0, %v217_v0  ;;  %v42_v3 = vld [vmem:[#allocation4 + $0x8] sm:$0xff]  ;;  %v41_v4 = vld [vmem:[#allocation4] sm:$0xff]  ;;  %v40_v5 = vld [vmem:[#allocation2] sm:$0xff]  ;;  %vm52_vm1 = vcmask 261120   ;;  %vm132_vm2 = vcmask 23552  }
  0x1b   :  { %149 = vmatpush3.msra.mxu0 %v44_v1  ;;  %v140_v6 = vld [vmem:[%s253_s2] ss:$0 sm:$0xff] }
  0x1c   :  { %150 = vmatprep.subr.mxu0 %v217_v0 }
  0x1d   :  { %151 = vmatpush3.msra.mxu0 %v43_v2 }
  0x1e   :  { %152 = vmatprep.subr.mxu0 %v217_v0 }
  0x1f   :  { %153 = vmatpush3.msra.mxu0 %v42_v3 }
  0x20   :  { %154 = vmatprep.subr.mxu0 %v217_v0 }
  0x21   :  { %155 = vmatpush3.msra.mxu0 %v41_v4 }
  0x22   :  { %157 = vmatmul.mubr.msk.f32.vlgmr.msra.gmra.mxu0 %vm52_vm1, %v40_v5 }
  0xe2   :  { %v122_v7 = vpop.f32.mrf.mxu0 }
  0xe3   :  { %v123_v8 = vadd.f32 %v140_v6, %v122_v7 }
  0xe4   :  { %v158_v9 = vpop.f32.mrf.mxu0 }
  0xe5   :  { %v142_v10 = vmul.f32 -1.442695, %v123_v8 }
  0xe7   :  { %165 = vpow2.f32 %v142_v10 }
  0xf4   :  { %v166_v11 = vpop.eup %165 }
  0xf5   :  { %v129_v12 = vadd.f32 1.0, %v166_v11 }
  0xf7   :  { %167 = vrcp.f32 %v129_v12 }
 0x104   :  { %v168_v13 = vpop.eup %167 }
 0x105   :  { %133 = vst.msk [vmem:[%s254_s3] sm:$0xff] %vm132_vm2, %v168_v13 }
 0x106   :  { %138 = vsyncpa [#allocation3], 1 }
 0x107   :  { %139 = vsyncpa [#allocation5], 1 }

</bundles_post_ra>
